<compile_context>
chip_gen: v7x
topology: tpu7x:2x2x1
jax: 0.10.0
libtpu: 0.0.40
codegen_flags: <defaults>
</compile_context>

<pallas_src>
import jax
import jax.numpy as jnp
from jax.experimental import pallas as pl
from jax.experimental.pallas import tpu as pltpu

HIDDEN_SIZE = 128


def _qnet_kernel(obs_ref, act_ref, w1_ref, b1_ref, w2_ref, b2_ref, w3_ref,
                 b3_ref, o_ref):
    dot_dtype = w1_ref.dtype  # bf16 (default) or f32; accumulation is f32.

    # torch.cat([obs, acts], -1) fused in-kernel: Do+Da lanes fit inside one
    # 128-lane group, so the concat is cheap lane plumbing and fc1 becomes a
    # single MXU dot (tm/8 pushes instead of 2*tm/8 with a split W1).
    x = jnp.concatenate(
        [obs_ref[...].astype(dot_dtype), act_ref[...].astype(dot_dtype)],
        axis=-1)

    # fc1 + ReLU (bias/ReLU in f32)
    h1 = jnp.dot(x, w1_ref[...], preferred_element_type=jnp.float32)
    h1 = jnp.maximum(h1 + b1_ref[...], 0.0)

    # fc2 + ReLU
    h2 = jnp.dot(h1.astype(dot_dtype), w2_ref[...],
                 preferred_element_type=jnp.float32)
    h2 = jnp.maximum(h2 + b2_ref[...], 0.0)

    # fc3 as w3 (1,H) contracted against h2 (tm,H) along H (A @ B.T form).
    # Result is a lane-dense (1, tm) row -> unmasked vst into the output slab,
    # instead of tm/8 masked single-lane stores for a (tm, 1) column.
    q = jax.lax.dot_general(w3_ref[...], h2,
                            dimension_numbers=(((1,), (1,)), ((), ())),
                            preferred_element_type=jnp.float32)
    o_ref[...] = (q + b3_ref[0, 0]).astype(o_ref.dtype)


def _round_up(x, m):
    return (x + m - 1) // m * m


def maddpg_q_forward(obs, acts, params, *, tm=1024, use_bf16=True):
    """obs: [B, obs_dim*num_agents], acts: [B, act_dim*num_agents] -> [B, 1] f32."""
    w1, b1, w2, b2, w3, b3 = params
    B, Do = obs.shape
    Ba, Da = acts.shape
    assert Ba == B, "obs/acts batch mismatch"
    Din, H = w1.shape
    assert Din == Do + Da, "W1 rows must equal obs_dim + act_dim (layout [in, out])"

    dot_dtype = jnp.bfloat16 if use_bf16 else jnp.float32
    w1c = w1.astype(dot_dtype)                       # unsplit W1 [Din, H]
    w2c = w2.astype(dot_dtype)
    b1r = b1.reshape(1, H).astype(jnp.float32)
    b2r = b2.reshape(1, H).astype(jnp.float32)
    w3r = w3.reshape(1, H).astype(jnp.float32)       # fc3 stays f32
    b3s = b3.reshape(1, 1).astype(jnp.float32)       # scalar, lives in SMEM

    # ---- batch tiling ------------------------------------------------------
    # Single tile for small batches; otherwise 128-aligned tiles (lane-dense
    # output blocks) capped so the "parallel" grid has >= 2 steps, which lets
    # v7x shard the grid across its 2 TensorCores.
    B8 = _round_up(B, 8)
    tm_cfg = max(128, _round_up(tm, 128))
    if B8 <= 2 * 128:
        tm_eff = B8                                   # one tile == full array
    else:
        half = _round_up(-(-B8 // 2), 128)            # ceil(B8/2), 128-aligned
        tm_eff = min(tm_cfg, half)
    Bp = _round_up(B8, tm_eff)
    if Bp != B:
        pad = Bp - B
        obs = jnp.pad(obs, ((0, pad), (0, 0)))
        acts = jnp.pad(acts, ((0, pad), (0, 0)))
    grid = (Bp // tm_eff,)

    def row_spec(d):
        return pl.BlockSpec((tm_eff, d), lambda i: (i, 0))

    def resident(shape):  # same block every step -> stays VMEM-resident
        return pl.BlockSpec(shape, lambda i: (0, 0))

    out = pl.pallas_call(
        _qnet_kernel,
        out_shape=jax.ShapeDtypeStruct((1, Bp), jnp.float32),
        grid=grid,
        in_specs=[
            row_spec(Do),                                        # obs tile
            row_spec(Da),                                        # acts tile
            resident((Din, H)),                                  # W1
            resident((1, H)),                                    # b1
            resident((H, H)),                                    # W2
            resident((1, H)),                                    # b2
            resident((1, H)),                                    # W3 row
            pl.BlockSpec(memory_space=pltpu.MemorySpace.SMEM),   # b3 scalar
        ],
        out_specs=pl.BlockSpec((1, tm_eff), lambda i: (0, i)),   # lane-dense
        compiler_params=pltpu.CompilerParams(
            dimension_semantics=("parallel",)),
    )(obs, acts, w1c, b1r, w2c, b2r, w3r, b3s)

    return out[0, :B].reshape(B, 1)


def init_params(key, in_dim, hidden):
    """Deterministic init mimicking nn.Linear's U(-1/sqrt(fan_in), 1/sqrt(fan_in))."""
    # TODO(synk): torch.manual_seed-based init is not reproduced bit-for-bit;
    # distribution matches nn.Linear's default.

    def linear(key, fan_in, fan_out):
        kw, kb = jax.random.split(key)
        bound = 1.0 / jnp.sqrt(float(fan_in))
        # stored as [in, out] (transposed relative to torch's [out, in])
        w = jax.random.uniform(kw, (fan_in, fan_out), jnp.float32, -bound, bound)
        b = jax.random.uniform(kb, (1, fan_out), jnp.float32, -bound, bound)
        return w, b

    k1, k2, k3 = jax.random.split(key, 3)
    w1, b1 = linear(k1, in_dim, hidden)
    w2, b2 = linear(k2, hidden, hidden)
    w3, b3 = linear(k3, hidden, 1)
    return (w1, b1, w2, b2, w3, b3)


def reference_forward(obs, acts, params, *, use_bf16=False):
    """Pure-JAX reference; use_bf16=True mirrors the kernel's bf16 dot operands."""
    w1, b1, w2, b2, w3, b3 = params
    dd = jnp.bfloat16 if use_bf16 else jnp.float32
    x = jnp.concatenate([obs, acts], axis=-1)
    h1 = jax.nn.relu(jnp.dot(x.astype(dd), w1.astype(dd),
                             preferred_element_type=jnp.float32) + b1.reshape(1, -1))
    h2 = jax.nn.relu(jnp.dot(h1.astype(dd), w2.astype(dd),
                             preferred_element_type=jnp.float32) + b2.reshape(1, -1))
    return jnp.dot(h2, w3.astype(jnp.float32),
                   preferred_element_type=jnp.float32) + b3.reshape(1, -1)


if __name__ == "__main__":
    # Small, MADDPG-ish shapes: 2 agents, obs_dim=12, act_dim=4, batch=8.
    batch, obs_dim, act_dim, num_agents = 8, 12, 4, 2
    full_obs_dim = obs_dim * num_agents      # 24
    full_act_dim = act_dim * num_agents      # 8
    in_dim = full_obs_dim + full_act_dim     # 32

    key = jax.random.PRNGKey(0)
    k_obs, k_act, k_par, k_obs2, k_act2 = jax.random.split(key, 5)
    obs = jax.random.normal(k_obs, (batch, full_obs_dim), jnp.float32)
    acts = jax.random.normal(k_act, (batch, full_act_dim), jnp.float32)
    params = init_params(k_par, in_dim, HIDDEN_SIZE)

    # f32 path: numerically faithful to the PyTorch module.
    q_f32 = jax.block_until_ready(maddpg_q_forward(obs, acts, params, use_bf16=False))
    ref_f32 = reference_forward(obs, acts, params, use_bf16=False)
    assert q_f32.shape == (batch, 1)
    assert jnp.allclose(q_f32, ref_f32, atol=1e-5, rtol=1e-5), "f32 mismatch vs reference"

    # bf16-MXU path (bandwidth-oriented default): compare against a matching-
    # precision reference.
    q_bf16 = jax.block_until_ready(maddpg_q_forward(obs, acts, params))
    ref_bf16 = reference_forward(obs, acts, params, use_bf16=True)
    assert q_bf16.shape == (batch, 1)
    assert jnp.allclose(q_bf16, ref_bf16, atol=1e-4, rtol=1e-4), "bf16 mismatch vs reference"

    # Multi-tile path: grid > 1, padded batch, lane-dense multi-block output.
    batch2 = 300
    obs2 = jax.random.normal(k_obs2, (batch2, full_obs_dim), jnp.float32)
    acts2 = jax.random.normal(k_act2, (batch2, full_act_dim), jnp.float32)
    q2 = jax.block_until_ready(maddpg_q_forward(obs2, acts2, params, use_bf16=False))
    ref2 = reference_forward(obs2, acts2, params, use_bf16=False)
    assert q2.shape == (batch2, 1)
    assert jnp.allclose(q2, ref2, atol=1e-5, rtol=1e-5), "multi-tile mismatch vs reference"

    print("KERNEL_OK")
</pallas_src>

<mosaic_0001>
module attributes {stable_mosaic.version = 11 : i64} {
  func.func @_qnet_kernel(%arg0: i32, %arg1: memref<8x24xf32, #tpu.memory_space<vmem>>, %arg2: memref<8x8xf32, #tpu.memory_space<vmem>>, %arg3: memref<32x128xf32, #tpu.memory_space<vmem>>, %arg4: memref<1x128xf32, #tpu.memory_space<vmem>>, %arg5: memref<128x128xf32, #tpu.memory_space<vmem>>, %arg6: memref<1x128xf32, #tpu.memory_space<vmem>>, %arg7: memref<1x128xf32, #tpu.memory_space<vmem>>, %arg8: memref<1x1xf32, #tpu.memory_space<smem>>, %arg9: memref<1x8xf32, #tpu.memory_space<vmem>>) attributes {dimension_semantics = [#tpu.dimension_semantics<parallel>], iteration_bounds = array<i64: 1>, scalar_prefetch = 0 : i64, scratch_operands = 0 : i64, tpu.core_type = #tpu.core_type<tc>, window_params = [{transform_indices = @transform_0, window_bounds = array<i64: 8, 24>}, {transform_indices = @transform_1, window_bounds = array<i64: 8, 8>}, {pipeline_mode = #tpu.pipeline_mode<synchronous>, transform_indices = @transform_2, window_bounds = array<i64: 32, 128>}, {pipeline_mode = #tpu.pipeline_mode<synchronous>, transform_indices = @transform_3, window_bounds = array<i64: 1, 128>}, {pipeline_mode = #tpu.pipeline_mode<synchronous>, transform_indices = @transform_4, window_bounds = array<i64: 128, 128>}, {pipeline_mode = #tpu.pipeline_mode<synchronous>, transform_indices = @transform_5, window_bounds = array<i64: 1, 128>}, {pipeline_mode = #tpu.pipeline_mode<synchronous>, transform_indices = @transform_6, window_bounds = array<i64: 1, 128>}, {transform_indices = @transform_7, window_bounds = array<i64: 1, 1>}, {transform_indices = @transform_8, window_bounds = array<i64: 1, 8>}]} {
    %c0 = arith.constant 0 : index
    %c0_0 = arith.constant 0 : index
    %0 = vector.load %arg1[%c0, %c0_0] : memref<8x24xf32, #tpu.memory_space<vmem>>, vector<8x24xf32>
    %c0_1 = arith.constant 0 : index
    %c0_2 = arith.constant 0 : index
    %1 = vector.load %arg2[%c0_1, %c0_2] : memref<8x8xf32, #tpu.memory_space<vmem>>, vector<8x8xf32>
    %2 = tpu.concatenate %0, %1 in 1 : vector<8x24xf32>, vector<8x8xf32> -> vector<8x32xf32>
    %c0_3 = arith.constant 0 : index
    %c0_4 = arith.constant 0 : index
    %3 = vector.load %arg3[%c0_3, %c0_4] : memref<32x128xf32, #tpu.memory_space<vmem>>, vector<32x128xf32>
    %cst = arith.constant dense<0.000000e+00> : vector<8x128xf32>
    %4 = tpu.matmul %2, %3, %cst {dimension_numbers = #tpu.dot_dimension_numbers<[1], [0], [0], [1], [0, 0, 1, 1], [], []>} : vector<8x32xf32>, vector<32x128xf32>, vector<8x128xf32> -> vector<8x128xf32>
    %c0_5 = arith.constant 0 : index
    %c0_6 = arith.constant 0 : index
    %5 = vector.load %arg4[%c0_5, %c0_6] : memref<1x128xf32, #tpu.memory_space<vmem>>, vector<1x128xf32>
    %6 = vector.broadcast %5 : vector<1x128xf32> to vector<8x128xf32>
    %7 = arith.addf %4, %6 : vector<8x128xf32>
    %cst_7 = arith.constant 0.000000e+00 : f32
    %8 = vector.broadcast %cst_7 : f32 to vector<8x128xf32>
    %9 = arith.maximumf %7, %8 : vector<8x128xf32>
    %c0_8 = arith.constant 0 : index
    %c0_9 = arith.constant 0 : index
    %10 = vector.load %arg5[%c0_8, %c0_9] : memref<128x128xf32, #tpu.memory_space<vmem>>, vector<128x128xf32>
    %cst_10 = arith.constant dense<0.000000e+00> : vector<8x128xf32>
    %11 = tpu.matmul %9, %10, %cst_10 {dimension_numbers = #tpu.dot_dimension_numbers<[1], [0], [0], [1], [0, 0, 1, 1], [], []>} : vector<8x128xf32>, vector<128x128xf32>, vector<8x128xf32> -> vector<8x128xf32>
    %c0_11 = arith.constant 0 : index
    %c0_12 = arith.constant 0 : index
    %12 = vector.load %arg6[%c0_11, %c0_12] : memref<1x128xf32, #tpu.memory_space<vmem>>, vector<1x128xf32>
    %13 = vector.broadcast %12 : vector<1x128xf32> to vector<8x128xf32>
    %14 = arith.addf %11, %13 : vector<8x128xf32>
    %cst_13 = arith.constant 0.000000e+00 : f32
    %15 = vector.broadcast %cst_13 : f32 to vector<8x128xf32>
    %16 = arith.maximumf %14, %15 : vector<8x128xf32>
    %c0_14 = arith.constant 0 : index
    %c0_15 = arith.constant 0 : index
    %17 = vector.load %arg7[%c0_14, %c0_15] : memref<1x128xf32, #tpu.memory_space<vmem>>, vector<1x128xf32>
    %cst_16 = arith.constant dense<0.000000e+00> : vector<1x8xf32>
    %18 = tpu.matmul %17, %16, %cst_16 {dimension_numbers = #tpu.dot_dimension_numbers<[1], [1], [0], [0], [0, 0, 1, 0], [], []>} : vector<1x128xf32>, vector<8x128xf32>, vector<1x8xf32> -> vector<1x8xf32>
    %c0_17 = arith.constant 0 : index
    %c0_18 = arith.constant 0 : index
    %19 = memref.load %arg8[%c0_17, %c0_18] : memref<1x1xf32, #tpu.memory_space<smem>>
    %20 = vector.broadcast %19 : f32 to vector<1x8xf32>
    %21 = arith.addf %18, %20 : vector<1x8xf32>
    %c0_19 = arith.constant 0 : index
    %c0_20 = arith.constant 0 : index
    %22 = vector.load %arg9[%c0_19, %c0_20] : memref<1x8xf32, #tpu.memory_space<vmem>>, vector<1x8xf32>
    tpu.vector_store %arg9[%c0_19, %c0_20], %21 {strides = array<i32>} : memref<1x8xf32, #tpu.memory_space<vmem>>, vector<1x8xf32>,
    return
  }
  func.func @transform_0(%arg0: i32) -> (i32, i32) {
    %c0_i32 = arith.constant 0 : i32
    %c0_i32_0 = arith.constant 0 : i32
    return %arg0, %c0_i32 : i32, i32
  }
  func.func @transform_1(%arg0: i32) -> (i32, i32) {
    %c0_i32 = arith.constant 0 : i32
    %c0_i32_0 = arith.constant 0 : i32
    return %arg0, %c0_i32 : i32, i32
  }
  func.func @transform_2(%arg0: i32) -> (i32, i32) {
    %c0_i32 = arith.constant 0 : i32
    %c0_i32_0 = arith.constant 0 : i32
    %c0_i32_1 = arith.constant 0 : i32
    return %c0_i32, %c0_i32_0 : i32, i32
  }
  func.func @transform_3(%arg0: i32) -> (i32, i32) {
    %c0_i32 = arith.constant 0 : i32
    %c0_i32_0 = arith.constant 0 : i32
    %c0_i32_1 = arith.constant 0 : i32
    return %c0_i32, %c0_i32_0 : i32, i32
  }
  func.func @transform_4(%arg0: i32) -> (i32, i32) {
    %c0_i32 = arith.constant 0 : i32
    %c0_i32_0 = arith.constant 0 : i32
    %c0_i32_1 = arith.constant 0 : i32
    return %c0_i32, %c0_i32_0 : i32, i32
  }
  func.func @transform_5(%arg0: i32) -> (i32, i32) {
    %c0_i32 = arith.constant 0 : i32
    %c0_i32_0 = arith.constant 0 : i32
    %c0_i32_1 = arith.constant 0 : i32
    return %c0_i32, %c0_i32_0 : i32, i32
  }
  func.func @transform_6(%arg0: i32) -> (i32, i32) {
    %c0_i32 = arith.constant 0 : i32
    %c0_i32_0 = arith.constant 0 : i32
    %c0_i32_1 = arith.constant 0 : i32
    return %c0_i32, %c0_i32_0 : i32, i32
  }
  func.func @transform_7(%arg0: i32) -> (i32, i32) {
    %c0_i32 = arith.constant 0 : i32
    %c0_i32_0 = arith.constant 0 : i32
    %c0_i32_1 = arith.constant 0 : i32
    return %c0_i32, %c0_i32_0 : i32, i32
  }
  func.func @transform_8(%arg0: i32) -> (i32, i32) {
    %c0_i32 = arith.constant 0 : i32
    %c0_i32_0 = arith.constant 0 : i32
    return %c0_i32, %arg0 : i32, i32
  }
}

</mosaic_0001>

<bundles_post_ra>
// kernel: tpu_custom_call.1
= control target key start
LH: loop header
LB: loop body
LE: loop exit
PB: predicated region body
PF: predicated region fallthrough
CT: control target
= control target key end

     0   :  { %14 = vsyncpa [#allocation4], 0  ;;  %s730_s0 = inlined_call_operand.hbm [shape: f32[8,24], index: 0, kind: input, shape index: {}]   ;;  %s731_s1 = inlined_call_operand.hbm [shape: f32[8,8], index: 1, kind: input, shape index: {}]   ;;  %s732_s2 = inlined_call_operand.hbm [shape: f32[32,128], index: 2, kind: input, shape index: {}]   ;;  %s733_s3 = inlined_call_operand.vmem [shape: f32[1,128], index: 3, kind: input, shape index: {}]   ;;  %s734_s4 = inlined_call_operand.hbm [shape: f32[128,128], index: 4, kind: input, shape index: {}]   ;;  %s735_s5 = inlined_call_operand.vmem [shape: f32[1,128], index: 5, kind: input, shape index: {}]   ;;  %s736_s6 = inlined_call_operand.vmem [shape: f32[1,128], index: 6, kind: input, shape index: {}]   ;;  %s737_s7 = inlined_call_operand.<no memory space> [shape: f32[1,1], index: 7, kind: input, shape index: {}]   ;;  %s738_s8 = inlined_call_operand.hbm [shape: f32[1,8], index: 8, kind: output, shape index: {}]  }
   0x1   :  { %15 = vsyncpa [#allocation7], 0 }
   0x2   :  { %16 = vsyncpa [#allocation10], 0 }
   0x3   :  { %17 = vsyncpa [#allocation5], 0  ;;  %s599_s27 = smov [#allocation6]   ;;  %s600_s29 = smov [#allocation3]  }
   0x4   :  { %s34_s28 = sshll.u32 %s599_s27, 4  ;;  %s24_s30 = sshll.u32 %s600_s29, 4  ;;  %s35_s28 = int_to_ptr.vmem [resolvable:$true] %s34_s28  ;;  %s25_s30 = int_to_ptr.vmem [resolvable:$true] %s24_s30 }
   0x5   :  { %s481_s11 = scalar_lea.hbm %s731_s1, 128 }
   0x6   :  { %p482_p0 = scmp.ne.s32.totalorder %s731_s1, %s481_s11  ;;  %p485_p1 = scmp.lt.u32.totalorder %s481_s11, %s731_s1 }
   0x8   :  { %p487_p2 = pnand %p485_p1, %p482_p0 }
   0xa   :  { %490 = shalt.err (!%p487_p2)
}
   0xb   :  { %s491_s16 = scalar_lea.vmem %s35_s28, 128  ;;  %p496_p4 = scmp.lt.s32.totalorder %s35_s28, %s35_s28 }
   0xc   :  { %p492_p3 = scmp.ne.s32.totalorder %s35_s28, %s491_s16  ;;  %p497_p5 = scmp.lt.s32.totalorder %s491_s16, %s491_s16 }
   0xe   :  { %p498_p6 = por %p497_p5, %p496_p4 }
  0x10   :  { %p499_p7 = pnand %p498_p6, %p492_p3 }
  0x12   :  { %502 = shalt.err (!%p499_p7)
}
  0x13   :  { %37 = dma.hbm_to_vmem [thread:$0]  %s731_s1, 128, %s35_s28, [#allocation7]  }
  0x14   :  { %s503_s21 = scalar_lea.hbm %s730_s0, 128 }
  0x15   :  { %p504_p8 = scmp.ne.s32.totalorder %s730_s0, %s503_s21  ;;  %p507_p9 = scmp.lt.u32.totalorder %s503_s21, %s730_s0 }
  0x17   :  { %p509_p10 = pnand %p507_p9, %p504_p8 }
  0x19   :  { %512 = shalt.err (!%p509_p10)
}
  0x1a   :  { %s513_s26 = scalar_lea.vmem %s25_s30, 128  ;;  %p518_p12 = scmp.lt.s32.totalorder %s25_s30, %s25_s30 }
  0x1b   :  { %p514_p11 = scmp.ne.s32.totalorder %s25_s30, %s513_s26  ;;  %p519_p13 = scmp.lt.s32.totalorder %s513_s26, %s513_s26 }
  0x1d   :  { %p520_p0 = por %p519_p13, %p518_p12 }
  0x1f   :  { %p521_p1 = pnand %p520_p0, %p514_p11 }
  0x21   :  { %524 = shalt.err (!%p521_p1)
}
  0x22   :  { %27 = dma.hbm_to_vmem [thread:$0]  %s730_s0, 128, %s25_s30, [#allocation4]  }
  0x23   :  { %s601_s28 = smov [#allocation8]   ;;  %s525_s11 = scalar_lea.hbm %s732_s2, 512 }
  0x24   :  { %s43_s29 = sshll.u32 %s601_s28, 4  ;;  %p526_p2 = scmp.ne.s32.totalorder %s732_s2, %s525_s11  ;;  %s44_s29 = int_to_ptr.vmem [resolvable:$true] %s43_s29 }
  0x25   :  { %p529_p3 = scmp.lt.u32.totalorder %s525_s11, %s732_s2 }
  0x27   :  { %p531_p4 = pnand %p529_p3, %p526_p2 }
  0x29   :  { %534 = shalt.err (!%p531_p4)
}
  0x2a   :  { %s535_s16 = scalar_lea.vmem %s44_s29, 512  ;;  %p540_p6 = scmp.lt.s32.totalorder %s44_s29, %s44_s29 }
  0x2b   :  { %p536_p5 = scmp.ne.s32.totalorder %s44_s29, %s535_s16  ;;  %p541_p7 = scmp.lt.s32.totalorder %s535_s16, %s535_s16 }
  0x2d   :  { %p542_p8 = por %p541_p7, %p540_p6 }
  0x2f   :  { %p543_p9 = pnand %p542_p8, %p536_p5 }
  0x31   :  { %546 = shalt.err (!%p543_p9)
}
  0x32   :  { %s602_s0 = smov 128   ;;  %s603_s30 = smov 8  }
  0x33   :  { %49 = dma.hbm_to_vmem [thread:$0]  %s732_s2, 512, %s44_s29, [#allocation7], %s602_s0, %s602_s0, %s603_s30  }
  0x34   :  { %s604_s19 = smov [#allocation9]   ;;  %s547_s23 = scalar_lea.hbm %s734_s4, 2048 }
  0x35   :  { %s57_s20 = sshll.u32 %s604_s19, 4  ;;  %p548_p10 = scmp.ne.s32.totalorder %s734_s4, %s547_s23  ;;  %s58_s20 = int_to_ptr.vmem [resolvable:$true] %s57_s20 }
  0x36   :  { %p551_p11 = scmp.lt.u32.totalorder %s547_s23, %s734_s4 }
  0x38   :  { %p553_p12 = pnand %p551_p11, %p548_p10 }
  0x3a   :  { %556 = shalt.err (!%p553_p12)
}
  0x3b   :  { %s557_s27 = scalar_lea.vmem %s58_s20, 2048  ;;  %p562_p0 = scmp.lt.s32.totalorder %s58_s20, %s58_s20 }
  0x3c   :  { %p558_p13 = scmp.ne.s32.totalorder %s58_s20, %s557_s27  ;;  %p563_p1 = scmp.lt.s32.totalorder %s557_s27, %s557_s27 }
  0x3e   :  { %p564_p2 = por %p563_p1, %p562_p0 }
  0x40   :  { %p565_p3 = pnand %p564_p2, %p558_p13 }
  0x42   :  { %568 = shalt.err (!%p565_p3)
}
  0x43   :  { %63 = dma.hbm_to_vmem [thread:$0]  %s734_s4, 2048, %s58_s20, [#allocation10], %s602_s0, %s602_s0, %s603_s30  }
  0x44   :  { %591 = dma.done.wait [#allocation4], 128  }
  0x45   :  { %592 = vsyncadd [#allocation4], 4294967168 }
  0x46   :  { %593 = dma.done.wait [#allocation7], 640  }
  0x47   :  { %594 = vsyncadd [#allocation7], 4294966656 }
  0x48   :  { %595 = dma.done.wait [#allocation10], 2048  }
  0x49   :  { %596 = vsyncadd [#allocation10], 4294965248  ;;  %v605_v0 = vmov 0.0|0.0   ;;  %vm606_vm0 = vmmov 0   ;;  %v607_v1 = vmov 0.0   ;;  %v83_v2 = vld [vmem:[#allocation6] sm:$0xff]  ;;  %v272_v47 = vstv %s737_s7 }
  0x4a   :  { %440 = vmatprep.subr.bf16.mxu0 %v605_v0  ;;  %446 = vmatprep.subr.bf16.mxu1 %v605_v0  ;;  %v90_v3 = vld [vmem:[#allocation8] sm:$0xff]  ;;  %v91_v4 = vld [vmem:[#allocation8 + $0x8] sm:$0xff]  ;;  %s608_s29 = smov 24   ;;  %v92_v6 = vld [vmem:[#allocation8 + $0x10] sm:$0xff]  ;;  %vm88_vm1 = vcmask 195584   ;;  %vm101_vm2 = vcmask 261120  }
  0x4b   :  { %397 = vmatprep.mubr.msk.f32.mxu0 %vm606_vm0, %v607_v1  ;;  %432 = vmatprep.mubr.msk.f32.mxu1 %vm606_vm0, %v607_v1  ;;  %v441_v5 = vpack.c.bf16 %v91_v4, %v90_v3  ;;  %v93_v7 = vld [vmem:[#allocation8 + $0x18] sm:$0xff]  ;;  %v176_v8 = vld [vmem:[#allocation9] sm:$0xff]  ;;  %v177_v9 = vld [vmem:[#allocation9 + $0x8] sm:$0xff]  ;;  %s609_s15 = smov [#allocation11]   ;;  %vm343_vm3 = vcmask 57344  }
  0x4c   :  { %85 = vrot.lane.b32.xlu0 %v83_v2, %s608_s29  ;;  %v178_v10 = vld [vmem:[#allocation9 + $0x10] sm:$0xff]  ;;  %v444_v11 = vpack.c.bf16 %v93_v7, %v92_v6  ;;  %v447_v12 = vpack.c.bf16 %v177_v9, %v176_v8  ;;  %v179_v13 = vld [vmem:[#allocation9 + $0x18] sm:$0xff]  ;;  %v180_v15 = vld [vmem:[#allocation9 + $0x20] sm:$0xff]  ;;  %s351_s16 = sshll.u32 %s609_s15, 4  ;;  %s352_s16 = int_to_ptr.vmem [resolvable:$true] %s351_s16 }
  0x4d   :  { %442 = vmatpush3.bf16.msra.mxu0 %v441_v5  ;;  %v450_v14 = vpack.c.bf16 %v179_v13, %v178_v10  ;;  %v181_v16 = vld [vmem:[#allocation9 + $0x28] sm:$0xff]  ;;  %v182_v18 = vld [vmem:[#allocation9 + $0x30] sm:$0xff]  ;;  %v183_v19 = vld [vmem:[#allocation9 + $0x38] sm:$0xff]  ;;  %s573_s0 = scalar_lea.vmem %s352_s16, 32  ;;  %p574_p5 = scmp.lt.s32.totalorder %s352_s16, %s352_s16 }
  0x4e   :  { %443 = vmatprep.subr.bf16.mxu0 %v605_v0  ;;  %448 = vmatpush3.bf16.msra.mxu1 %v447_v12  ;;  %v453_v17 = vpack.c.bf16 %v181_v16, %v180_v15  ;;  %v456_v20 = vpack.c.bf16 %v183_v19, %v182_v18  ;;  %v184_v21 = vld [vmem:[#allocation9 + $0x40] sm:$0xff]  ;;  %v185_v22 = vld [vmem:[#allocation9 + $0x48] sm:$0xff]  ;;  %v186_v24 = vld [vmem:[#allocation9 + $0x50] sm:$0xff] }
  0x4f   :  { %449 = vmatprep.subr.bf16.mxu1 %v605_v0  ;;  %v459_v23 = vpack.c.bf16 %v185_v22, %v184_v21  ;;  %v187_v25 = vld [vmem:[#allocation9 + $0x58] sm:$0xff]  ;;  %v188_v27 = vld [vmem:[#allocation9 + $0x60] sm:$0xff]  ;;  %v189_v28 = vld [vmem:[#allocation9 + $0x68] sm:$0xff] }
  0x50   :  { %v462_v26 = vpack.c.bf16 %v187_v25, %v186_v24  ;;  %v465_v29 = vpack.c.bf16 %v189_v28, %v188_v27  ;;  %v82_v30 = vld [vmem:[#allocation3] sm:$0xff]  ;;  %v191_v34 = vld [vmem:[#allocation9 + $0x78] sm:$0xff] }
  0x51   :  { %445 = vmatpush3.bf16.msra.mxu0 %v444_v11  ;;  %v190_v33 = vld [vmem:[#allocation9 + $0x70] sm:$0xff] }
  0x52   :  { %435 = vmatprep.subr.mxu0 %v607_v1  ;;  %451 = vmatpush3.bf16.msra.mxu1 %v450_v14  ;;  %v468_v35 = vpack.c.bf16 %v191_v34, %v190_v33  ;;  %v362_v36 = vld [vmem:[%s733_s3] ss:$0 sm:$0xff] }
  0x53   :  { %452 = vmatprep.subr.bf16.mxu1 %v605_v0  ;;  %v364_v41 = vld [vmem:[%s735_s5] ss:$0 sm:$0xff]  ;;  %s569_s5 = scalar_lea.vmem %s352_s16, 16 }
  0x54   :  { %v270_v46 = vld [vmem:[%s736_s6] sm:$0x1]  ;;  %p570_p4 = scmp.ne.s32.totalorder %s352_s16, %s569_s5  ;;  %p575_p6 = scmp.lt.s32.totalorder %s573_s0, %s569_s5 }
  0x56   :  { %454 = vmatpush3.bf16.msra.mxu1 %v453_v17  ;;  %p576_p7 = por %p575_p6, %p574_p5 }
  0x57   :  { %455 = vmatprep.subr.bf16.mxu1 %v605_v0 }
  0x58   :  { %p577_p8 = pnand %p576_p7, %p570_p4 }
  0x5a   :  { %457 = vmatpush3.bf16.msra.mxu1 %v456_v20 }
  0x5b   :  { %458 = vmatprep.subr.bf16.mxu1 %v605_v0 }
  0x5e   :  { %460 = vmatpush3.bf16.msra.mxu1 %v459_v23 }
  0x5f   :  { %461 = vmatprep.subr.bf16.mxu1 %v605_v0 }
  0x62   :  { %463 = vmatpush3.bf16.msra.mxu1 %v462_v26 }
  0x63   :  { %464 = vmatprep.subr.bf16.mxu1 %v605_v0 }
  0x66   :  { %466 = vmatpush3.bf16.msra.mxu1 %v465_v29 }
  0x67   :  { %467 = vmatprep.subr.bf16.mxu1 %v605_v0 }
  0x6a   :  { %469 = vmatpush3.bf16.msra.mxu1 %v468_v35 }
  0xbe   :  { %v86_v31 = vpop.permute.xlu0 %85 }
  0xbf   :  { %v89_v32 = vsel %vm88_vm1, %v82_v30, %v86_v31 }
  0xc0   :  { %398 = vmatmul.mubr.msk.f32.vlgmr.msra.gmra.mrb[0].mxu0 %vm101_vm2, %v89_v32 }
  0xc1   :  { %437 = vmatprep.mubr.msk.f32.mxu0 %vm606_vm0, %v607_v1 }
 0x193   :  { %v171_v37 = vpop.f32.mrb[0].mxu0 }
 0x194   :  { %v172_v38 = vadd.f32 %v362_v36, %v171_v37  ;;  %v399_v39 = vpop.f32.mrb[1].mxu0 }
 0x196   :  { %v175_v40 = vmax.f32 %v172_v38, 0.0 }
 0x198   :  { %433 = vmatmul.mubr.f32.vlgmr.msra.gmra.mrb[0].mxu1 %v175_v40 }
 0x26b   :  { %v265_v42 = vpop.f32.mrb[0].mxu1 }
 0x26c   :  { %v266_v43 = vadd.f32 %v364_v41, %v265_v42  ;;  %v434_v44 = vpop.f32.mrb[1].mxu1 }
 0x26e   :  { %v269_v45 = vmax.f32 %v266_v43, 0.0 }
 0x270   :  { %436 = vmatpush3.xpose.msra.mxu0 %v269_v45 }
 0x273   :  { %438 = vmatmul.mubr.f32.vlgmr.msra.gmra.mrb[2].mxu0 %v270_v46 }
 0x346   :  { %v339_v48 = vpop.f32.mrb[2].mxu0 }
 0x347   :  { %v340_v49 = vadd.f32 %v339_v48, %v272_v47  ;;  %v439_v50 = vpop.f32.mrb[3].mxu0 }
 0x349   :  { %344 = vst.msk [vmem:[#allocation11] sm:$0x1] %vm343_vm3, %v340_v49 }
 0x34a   :  { %580 = shalt.err (!%p577_p8)
}
 0x34b   :  { %s581_s7 = scalar_lea.hbm %s738_s8, 16 }
 0x34c   :  { %p582_p9 = scmp.ne.s32.totalorder %s738_s8, %s581_s7  ;;  %p585_p10 = scmp.lt.u32.totalorder %s581_s7, %s738_s8 }
 0x34e   :  { %p587_p11 = pnand %p585_p10, %p582_p9 }
 0x350   :  { %590 = shalt.err (!%p587_p11)
}
 0x351   :  { %354 = dma.vmem_to_hbm [thread:$0]  %s352_s16, 16, %s738_s8, [#allocation5]  }
 0x352   :  { %597 = dma.done.wait [#allocation5], 16  }
 0x353   :  { %598 = vsyncadd [#allocation5], 4294967280 }
 0x354   :  { %358 = vsyncpa [#allocation4], 1 }
 0x355   :  { %359 = vsyncpa [#allocation7], 1 }
 0x356   :  { %360 = vsyncpa [#allocation10], 1 }
 0x357   :  { %361 = vsyncpa [#allocation5], 1 }

</bundles_post_ra>
